<compile_context>
chip_gen: v7x
topology: tpu7x:2x2x1
jax: 0.10.0
libtpu: 0.0.40
codegen_flags: <defaults>
</compile_context>

<pallas_src>
import functools

import jax
import jax.numpy as jnp
from jax.experimental import pallas as pl
from jax.experimental.pallas import tpu as pltpu


def _round_up(x, m):
    return ((x + m - 1) // m) * m


def _variance_predictor_kernel(
    x_ref, mask_ref,
    w1_ref, b1_ref, g1_ref, be1_ref,
    w2_ref, b2_ref, g2_ref, be2_ref,
    wp_ref, bp_ref,
    o_ref,
    *, K, P2, eps=1e-5,
):
    W = x_ref.shape[-1]

    def stack_taps(v):
        # Fold the K conv taps into the contraction dim: sublane block j holds
        # v shifted left by j.  The shifts are circular, but wrapped columns
        # only ever land on masked / discarded output positions (guaranteed by
        # the static Wseg assert in the wrapper).
        parts = [v] + [pltpu.roll(v, shift=(-j) % W, axis=1) for j in range(1, K)]
        return jnp.concatenate(parts, axis=0)

    def layer_norm(h, g, b):
        # Single-pass statistics over channels (sublane axis), f32 throughout.
        mu = jnp.mean(h, axis=0, keepdims=True)
        m2 = jnp.mean(h * h, axis=0, keepdims=True)
        var = m2 - mu * mu
        return (h - mu) * jax.lax.rsqrt(var + eps) * g + b

    # ---- conv1 + ReLU + LayerNorm1: one depth-(K*Cin) MXU matmul ----
    h = jnp.dot(w1_ref[...], stack_taps(x_ref[...]),
                preferred_element_type=jnp.float32)
    h = jnp.maximum(h + b1_ref[...], 0.0)
    h = layer_norm(h, g1_ref[...], be1_ref[...])

    # Mask invalid inter-segment columns and roll right by P2 -- on the bf16
    # conv2 operand so the VPU/XLU touch half the vregs.  Each segment then
    # reads as [P2 zeros | h | zeros]: the zero-padded conv2 input.
    hb = h.astype(w2_ref.dtype) * mask_ref[...]
    hb = pltpu.roll(hb, shift=P2, axis=1)

    # ---- conv2 + ReLU + LayerNorm2 (dropout = identity at inference) ----
    h2 = jnp.dot(w2_ref[...], stack_taps(hb), preferred_element_type=jnp.float32)
    h2 = jnp.maximum(h2 + b2_ref[...], 0.0)
    h2 = layer_norm(h2, g2_ref[...], be2_ref[...])

    # ---- proj: Linear(H, 1) as VPU multiply + sublane reduce (lane-dense) ----
    y = jnp.sum(h2 * wp_ref[...], axis=0, keepdims=True) + bp_ref[...]
    o_ref[...] = y.astype(o_ref.dtype)


def variance_predictor(x, params, *, kernel_size, use_bf16=True):
    """x: (B, T, encoder_embed_dim) float32 -> (B, T_out) float32."""
    B, T, Cin = x.shape
    K = kernel_size
    P1 = (K - 1) // 2            # conv1 padding
    P2 = 1                       # conv2 padding is hardcoded to 1 in the module
    w1, b1, g1, be1, w2, b2, g2, be2, wp, bp = params
    H = w1.shape[0]
    Tp = T + 2 * P1              # conv1 padded input length
    T1 = Tp - (K - 1)            # length after conv1
    T2 = T1 + 2 * P2 - (K - 1)   # length after conv2 (== final length)

    # Per-batch segment width on the lane axis: must hold both the conv1 input
    # (Tp) and the padded conv2 input (T1 + 2*P2); rounded to 128.
    Wseg = _round_up(max(Tp, T1 + 2 * P2), 128)
    # Circular rolls inside the kernel only wrap into masked/discarded columns
    # iff both padded views fit within one segment.  Keep this assert.
    assert Wseg >= Tp and Wseg >= T1 + 2 * P2, (Wseg, Tp, T1, P2)

    cdt = jnp.bfloat16 if use_bf16 else jnp.float32
    itm = jnp.dtype(cdt).itemsize

    # --- group-of-segments tiling: DMA pipelining, megacore, VMEM bound ---
    bytes_per_col = (2 * itm * Cin       # x block (double-buffered)
                     + 2 * 4             # f32 output block (double-buffered)
                     + itm * K * Cin     # stacked conv1 operand
                     + itm * K * H       # stacked conv2 operand
                     + 3 * 4 * H)        # f32 intermediates (h, h2, temporaries)
    budget = 12 << 20                    # per-step footprint target (v7x: 64 MiB VMEM)
    max_cols = max(Wseg, (budget // bytes_per_col) // 128 * 128)
    want_cols = min(max_cols, max(2048, Wseg))   # >= ~2048 lanes/step for DMA efficiency
    G = max(1, min(B, want_cols // Wseg))
    num_blocks = pl.cdiv(B, G)
    Bpad = num_blocks * G
    Wblk = G * Wseg

    # Stack batches along lanes: (Cin, Bpad*Wseg); x_b sits at column offset P1
    # of its segment (providing conv1's zero padding); zero segments pad B->Bpad.
    xp = jnp.pad(x, ((0, Bpad - B), (P1, Wseg - P1 - T), (0, 0)))     # (Bpad, Wseg, Cin)
    xstk = jnp.transpose(xp, (2, 0, 1)).reshape(Cin, Bpad * Wseg).astype(cdt)
    # TODO(synk): if this wrapper pad/transpose shows up in xprof, accept
    # (B, Cin, T) from upstream or grid over B and zero-fill a VMEM scratch.

    # Per-block validity mask (identical for every block -> constant index_map,
    # DMA'd once; size independent of B*T).
    pos = jnp.arange(Wblk, dtype=jnp.int32) % Wseg
    mask_blk = (pos < T1).astype(cdt).reshape(1, Wblk)

    # Params: conv (O, I, K) -> (O, K*I) so the taps live in the contraction
    # dim; per-channel vectors -> (H, 1) f32 columns.
    w1f = jnp.transpose(w1, (0, 2, 1)).reshape(H, K * Cin).astype(cdt)
    w2f = jnp.transpose(w2, (0, 2, 1)).reshape(H, K * H).astype(cdt)
    col = lambda v: v.reshape(-1, 1).astype(jnp.float32)
    b1c, g1c, be1c = col(b1), col(g1), col(be1)
    b2c, g2c, be2c = col(b2), col(g2), col(be2)
    wpc = col(wp)                                   # (H, 1)
    bpc = bp.reshape(1, 1).astype(jnp.float32)

    kern = functools.partial(_variance_predictor_kernel, K=K, P2=P2)

    def const_spec(shape):
        zeros = (0,) * len(shape)
        return pl.BlockSpec(shape, lambda i, _z=zeros: _z)

    vmem_limit = int(min(64 << 20, max(32 << 20, 2 * bytes_per_col * Wblk)))

    out = pl.pallas_call(
        kern,
        out_shape=jax.ShapeDtypeStruct((1, Bpad * Wseg), jnp.float32),
        grid=(num_blocks,),
        in_specs=[
            pl.BlockSpec((Cin, Wblk), lambda i: (0, i)),
            const_spec((1, Wblk)),
            const_spec((H, K * Cin)), const_spec((H, 1)), const_spec((H, 1)), const_spec((H, 1)),
            const_spec((H, K * H)),   const_spec((H, 1)), const_spec((H, 1)), const_spec((H, 1)),
            const_spec((H, 1)),       const_spec((1, 1)),
        ],
        out_specs=pl.BlockSpec((1, Wblk), lambda i: (0, i)),
        compiler_params=pltpu.CompilerParams(
            dimension_semantics=("parallel",),
            vmem_limit_bytes=vmem_limit),
    )(xstk, mask_blk, w1f, b1c, g1c, be1c, w2f, b2c, g2c, be2c, wpc, bpc)

    # Un-stack: segment b, columns [0, T2) -> output row b.
    return out.reshape(Bpad, Wseg)[:B, :T2].astype(x.dtype)


def reference(x, params, *, kernel_size):
    """Pure-JAX reference mirroring the PyTorch forward (eval mode)."""
    w1, b1, g1, be1, w2, b2, g2, be2, wp, bp = params
    K = kernel_size
    P1 = (K - 1) // 2
    P2 = 1

    def conv1d(h, w_oik, b, pad):
        w_wio = jnp.transpose(w_oik, (2, 1, 0))
        y = jax.lax.conv_general_dilated(
            h, w_wio, window_strides=(1,), padding=[(pad, pad)],
            dimension_numbers=("NWC", "WIO", "NWC"))
        return y + b

    def ln(h, g, be):
        mu = jnp.mean(h, axis=-1, keepdims=True)
        var = jnp.mean(jnp.square(h - mu), axis=-1, keepdims=True)
        return (h - mu) * jax.lax.rsqrt(var + 1e-5) * g + be

    h = jax.nn.relu(conv1d(x, w1, b1, P1))
    h = ln(h, g1, be1)
    h = jax.nn.relu(conv1d(h, w2, b2, P2))
    h = ln(h, g2, be2)
    y = h @ wp.T + bp
    return y[..., 0]


if __name__ == "__main__":
    def make_params(key, ENC, HID, K):
        ks = jax.random.split(key, 10)
        s = 0.1
        w1  = s * jax.random.normal(ks[0], (HID, ENC, K), jnp.float32)   # Conv1d (O, I, K)
        b1  = s * jax.random.normal(ks[1], (HID,), jnp.float32)
        g1  = 1.0 + s * jax.random.normal(ks[2], (HID,), jnp.float32)    # LayerNorm weight
        be1 = s * jax.random.normal(ks[3], (HID,), jnp.float32)          # LayerNorm bias
        w2  = s * jax.random.normal(ks[4], (HID, HID, K), jnp.float32)
        b2  = s * jax.random.normal(ks[5], (HID,), jnp.float32)
        g2  = 1.0 + s * jax.random.normal(ks[6], (HID,), jnp.float32)
        be2 = s * jax.random.normal(ks[7], (HID,), jnp.float32)
        wp  = s * jax.random.normal(ks[8], (1, HID), jnp.float32)        # Linear (out, in)
        bp  = s * jax.random.normal(ks[9], (1,), jnp.float32)
        return (w1, b1, g1, be1, w2, b2, g2, be2, wp, bp)

    def check(B, T, ENC, HID, K, key, f32_tol, bf16_tol):
        kx, kp = jax.random.split(key)
        x = jax.random.normal(kx, (B, T, ENC), jnp.float32)
        params = make_params(kp, ENC, HID, K)
        ref = reference(x, params, kernel_size=K)

        # Structural check (folded-tap matmuls / masking / rolls) in f32.
        out_f32 = jax.block_until_ready(
            variance_predictor(x, params, kernel_size=K, use_bf16=False))
        assert out_f32.shape == ref.shape, (out_f32.shape, ref.shape)
        if not bool(jnp.allclose(out_f32, ref, rtol=f32_tol, atol=f32_tol)):
            raise AssertionError(
                f"f32 mismatch (B={B},T={T}): "
                f"max abs err {float(jnp.max(jnp.abs(out_f32 - ref)))}")

        # bf16 MXU fast path (loose tolerance appropriate for bf16 inputs).
        out_bf16 = jax.block_until_ready(
            variance_predictor(x, params, kernel_size=K, use_bf16=True))
        assert out_bf16.shape == ref.shape, (out_bf16.shape, ref.shape)
        if not bool(jnp.allclose(out_bf16, ref, rtol=bf16_tol, atol=bf16_tol)):
            raise AssertionError(
                f"bf16 mismatch (B={B},T={T}): "
                f"max abs err {float(jnp.max(jnp.abs(out_bf16 - ref)))}")

    # Small shape (encoder_embed_dim = var_pred_hidden_dim = 32, kernel 3).
    check(B=2, T=16, ENC=32, HID=32, K=3, key=jax.random.PRNGKey(0),
          f32_tol=5e-4, bf16_tol=5e-2)
    # Larger shape exercising the tiled grid (>1 step, batch padding, parallel
    # dimension semantics for v7x megacore).
    check(B=10, T=200, ENC=32, HID=32, K=3, key=jax.random.PRNGKey(1),
          f32_tol=1e-3, bf16_tol=1e-1)

    print("KERNEL_OK")
</pallas_src>

<mosaic_0001>
module attributes {stable_mosaic.version = 11 : i64} {
  func.func @_variance_predictor_kernel(%arg0: i32, %arg1: memref<32x256xf32, #tpu.memory_space<vmem>>, %arg2: memref<1x256xf32, #tpu.memory_space<vmem>>, %arg3: memref<32x96xf32, #tpu.memory_space<vmem>>, %arg4: memref<32x1xf32, #tpu.memory_space<vmem>>, %arg5: memref<32x1xf32, #tpu.memory_space<vmem>>, %arg6: memref<32x1xf32, #tpu.memory_space<vmem>>, %arg7: memref<32x96xf32, #tpu.memory_space<vmem>>, %arg8: memref<32x1xf32, #tpu.memory_space<vmem>>, %arg9: memref<32x1xf32, #tpu.memory_space<vmem>>, %arg10: memref<32x1xf32, #tpu.memory_space<vmem>>, %arg11: memref<32x1xf32, #tpu.memory_space<vmem>>, %arg12: memref<1x1xf32, #tpu.memory_space<vmem>>, %arg13: memref<1x256xf32, #tpu.memory_space<vmem>>) attributes {dimension_semantics = [#tpu.dimension_semantics<parallel>], iteration_bounds = array<i64: 1>, scalar_prefetch = 0 : i64, scratch_operands = 0 : i64, tpu.core_type = #tpu.core_type<tc>, window_params = [{transform_indices = @transform_0, window_bounds = array<i64: 32, 256>}, {pipeline_mode = #tpu.pipeline_mode<synchronous>, transform_indices = @transform_1, window_bounds = array<i64: 1, 256>}, {pipeline_mode = #tpu.pipeline_mode<synchronous>, transform_indices = @transform_2, window_bounds = array<i64: 32, 96>}, {pipeline_mode = #tpu.pipeline_mode<synchronous>, transform_indices = @transform_3, window_bounds = array<i64: 32, 1>}, {pipeline_mode = #tpu.pipeline_mode<synchronous>, transform_indices = @transform_4, window_bounds = array<i64: 32, 1>}, {pipeline_mode = #tpu.pipeline_mode<synchronous>, transform_indices = @transform_5, window_bounds = array<i64: 32, 1>}, {pipeline_mode = #tpu.pipeline_mode<synchronous>, transform_indices = @transform_6, window_bounds = array<i64: 32, 96>}, {pipeline_mode = #tpu.pipeline_mode<synchronous>, transform_indices = @transform_7, window_bounds = array<i64: 32, 1>}, {pipeline_mode = #tpu.pipeline_mode<synchronous>, transform_indices = @transform_8, window_bounds = array<i64: 32, 1>}, {pipeline_mode = #tpu.pipeline_mode<synchronous>, transform_indices = @transform_9, window_bounds = array<i64: 32, 1>}, {pipeline_mode = #tpu.pipeline_mode<synchronous>, transform_indices = @transform_10, window_bounds = array<i64: 32, 1>}, {pipeline_mode = #tpu.pipeline_mode<synchronous>, transform_indices = @transform_11, window_bounds = array<i64: 1, 1>}, {transform_indices = @transform_12, window_bounds = array<i64: 1, 256>}]} {
    %c0 = arith.constant 0 : index
    %c0_0 = arith.constant 0 : index
    %0 = vector.load %arg3[%c0, %c0_0] : memref<32x96xf32, #tpu.memory_space<vmem>>, vector<32x96xf32>
    %c0_1 = arith.constant 0 : index
    %c0_2 = arith.constant 0 : index
    %1 = vector.load %arg1[%c0_1, %c0_2] : memref<32x256xf32, #tpu.memory_space<vmem>>, vector<32x256xf32>
    %c255_i32 = arith.constant 255 : i32
    %2 = tpu.dynamic_rotate %1 by %c255_i32 dim 1 : vector<32x256xf32>, i32 -> vector<32x256xf32>
    %c254_i32 = arith.constant 254 : i32
    %3 = tpu.dynamic_rotate %1 by %c254_i32 dim 1 : vector<32x256xf32>, i32 -> vector<32x256xf32>
    %4 = tpu.concatenate %1, %2, %3 in 0 : vector<32x256xf32>, vector<32x256xf32>, vector<32x256xf32> -> vector<96x256xf32>
    %cst = arith.constant dense<0.000000e+00> : vector<32x256xf32>
    %5 = tpu.matmul %0, %4, %cst {dimension_numbers = #tpu.dot_dimension_numbers<[1], [0], [0], [1], [0, 0, 1, 1], [], []>} : vector<32x96xf32>, vector<96x256xf32>, vector<32x256xf32> -> vector<32x256xf32>
    %c0_3 = arith.constant 0 : index
    %c0_4 = arith.constant 0 : index
    %6 = vector.load %arg4[%c0_3, %c0_4] : memref<32x1xf32, #tpu.memory_space<vmem>>, vector<32x1xf32>
    %7 = vector.broadcast %6 : vector<32x1xf32> to vector<32x256xf32>
    %8 = arith.addf %5, %7 : vector<32x256xf32>
    %cst_5 = arith.constant 0.000000e+00 : f32
    %9 = vector.broadcast %cst_5 : f32 to vector<32x256xf32>
    %10 = arith.maximumf %8, %9 : vector<32x256xf32>
    %c0_6 = arith.constant 0 : index
    %c0_7 = arith.constant 0 : index
    %11 = vector.load %arg5[%c0_6, %c0_7] : memref<32x1xf32, #tpu.memory_space<vmem>>, vector<32x1xf32>
    %c0_8 = arith.constant 0 : index
    %c0_9 = arith.constant 0 : index
    %12 = vector.load %arg6[%c0_8, %c0_9] : memref<32x1xf32, #tpu.memory_space<vmem>>, vector<32x1xf32>
    %cst_10 = arith.constant dense<0.000000e+00> : vector<256xf32>
    %13 = vector.multi_reduction <add>, %10, %cst_10 [0] : vector<32x256xf32> to vector<256xf32>
    %14 = vector.shape_cast %13 : vector<256xf32> to vector<1x256xf32>
    %cst_11 = arith.constant 3.200000e+01 : f32
    %15 = vector.broadcast %cst_11 : f32 to vector<1x256xf32>
    %16 = arith.divf %14, %15 : vector<1x256xf32>
    %17 = arith.mulf %10, %10 : vector<32x256xf32>
    %cst_12 = arith.constant dense<0.000000e+00> : vector<256xf32>
    %18 = vector.multi_reduction <add>, %17, %cst_12 [0] : vector<32x256xf32> to vector<256xf32>
    %19 = vector.shape_cast %18 : vector<256xf32> to vector<1x256xf32>
    %cst_13 = arith.constant 3.200000e+01 : f32
    %20 = vector.broadcast %cst_13 : f32 to vector<1x256xf32>
    %21 = arith.divf %19, %20 : vector<1x256xf32>
    %22 = arith.mulf %16, %16 : vector<1x256xf32>
    %23 = arith.subf %21, %22 : vector<1x256xf32>
    %24 = vector.broadcast %16 : vector<1x256xf32> to vector<32x256xf32>
    %25 = arith.subf %10, %24 : vector<32x256xf32>
    %cst_14 = arith.constant 9.99999974E-6 : f32
    %26 = vector.broadcast %cst_14 : f32 to vector<1x256xf32>
    %27 = arith.addf %23, %26 : vector<1x256xf32>
    %28 = math.rsqrt %27 : vector<1x256xf32>
    %29 = vector.broadcast %28 : vector<1x256xf32> to vector<32x256xf32>
    %30 = arith.mulf %25, %29 : vector<32x256xf32>
    %31 = vector.broadcast %11 : vector<32x1xf32> to vector<32x256xf32>
    %32 = arith.mulf %30, %31 : vector<32x256xf32>
    %33 = vector.broadcast %12 : vector<32x1xf32> to vector<32x256xf32>
    %34 = arith.addf %32, %33 : vector<32x256xf32>
    %c0_15 = arith.constant 0 : index
    %c0_16 = arith.constant 0 : index
    %35 = vector.load %arg2[%c0_15, %c0_16] : memref<1x256xf32, #tpu.memory_space<vmem>>, vector<1x256xf32>
    %36 = vector.broadcast %35 : vector<1x256xf32> to vector<32x256xf32>
    %37 = arith.mulf %34, %36 : vector<32x256xf32>
    %c1_i32 = arith.constant 1 : i32
    %38 = tpu.dynamic_rotate %37 by %c1_i32 dim 1 : vector<32x256xf32>, i32 -> vector<32x256xf32>
    %c0_17 = arith.constant 0 : index
    %c0_18 = arith.constant 0 : index
    %39 = vector.load %arg7[%c0_17, %c0_18] : memref<32x96xf32, #tpu.memory_space<vmem>>, vector<32x96xf32>
    %c255_i32_19 = arith.constant 255 : i32
    %40 = tpu.dynamic_rotate %38 by %c255_i32_19 dim 1 : vector<32x256xf32>, i32 -> vector<32x256xf32>
    %c254_i32_20 = arith.constant 254 : i32
    %41 = tpu.dynamic_rotate %38 by %c254_i32_20 dim 1 : vector<32x256xf32>, i32 -> vector<32x256xf32>
    %42 = tpu.concatenate %38, %40, %41 in 0 : vector<32x256xf32>, vector<32x256xf32>, vector<32x256xf32> -> vector<96x256xf32>
    %cst_21 = arith.constant dense<0.000000e+00> : vector<32x256xf32>
    %43 = tpu.matmul %39, %42, %cst_21 {dimension_numbers = #tpu.dot_dimension_numbers<[1], [0], [0], [1], [0, 0, 1, 1], [], []>} : vector<32x96xf32>, vector<96x256xf32>, vector<32x256xf32> -> vector<32x256xf32>
    %c0_22 = arith.constant 0 : index
    %c0_23 = arith.constant 0 : index
    %44 = vector.load %arg8[%c0_22, %c0_23] : memref<32x1xf32, #tpu.memory_space<vmem>>, vector<32x1xf32>
    %45 = vector.broadcast %44 : vector<32x1xf32> to vector<32x256xf32>
    %46 = arith.addf %43, %45 : vector<32x256xf32>
    %cst_24 = arith.constant 0.000000e+00 : f32
    %47 = vector.broadcast %cst_24 : f32 to vector<32x256xf32>
    %48 = arith.maximumf %46, %47 : vector<32x256xf32>
    %c0_25 = arith.constant 0 : index
    %c0_26 = arith.constant 0 : index
    %49 = vector.load %arg9[%c0_25, %c0_26] : memref<32x1xf32, #tpu.memory_space<vmem>>, vector<32x1xf32>
    %c0_27 = arith.constant 0 : index
    %c0_28 = arith.constant 0 : index
    %50 = vector.load %arg10[%c0_27, %c0_28] : memref<32x1xf32, #tpu.memory_space<vmem>>, vector<32x1xf32>
    %cst_29 = arith.constant dense<0.000000e+00> : vector<256xf32>
    %51 = vector.multi_reduction <add>, %48, %cst_29 [0] : vector<32x256xf32> to vector<256xf32>
    %52 = vector.shape_cast %51 : vector<256xf32> to vector<1x256xf32>
    %cst_30 = arith.constant 3.200000e+01 : f32
    %53 = vector.broadcast %cst_30 : f32 to vector<1x256xf32>
    %54 = arith.divf %52, %53 : vector<1x256xf32>
    %55 = arith.mulf %48, %48 : vector<32x256xf32>
    %cst_31 = arith.constant dense<0.000000e+00> : vector<256xf32>
    %56 = vector.multi_reduction <add>, %55, %cst_31 [0] : vector<32x256xf32> to vector<256xf32>
    %57 = vector.shape_cast %56 : vector<256xf32> to vector<1x256xf32>
    %cst_32 = arith.constant 3.200000e+01 : f32
    %58 = vector.broadcast %cst_32 : f32 to vector<1x256xf32>
    %59 = arith.divf %57, %58 : vector<1x256xf32>
    %60 = arith.mulf %54, %54 : vector<1x256xf32>
    %61 = arith.subf %59, %60 : vector<1x256xf32>
    %62 = vector.broadcast %54 : vector<1x256xf32> to vector<32x256xf32>
    %63 = arith.subf %48, %62 : vector<32x256xf32>
    %cst_33 = arith.constant 9.99999974E-6 : f32
    %64 = vector.broadcast %cst_33 : f32 to vector<1x256xf32>
    %65 = arith.addf %61, %64 : vector<1x256xf32>
    %66 = math.rsqrt %65 : vector<1x256xf32>
    %67 = vector.broadcast %66 : vector<1x256xf32> to vector<32x256xf32>
    %68 = arith.mulf %63, %67 : vector<32x256xf32>
    %69 = vector.broadcast %49 : vector<32x1xf32> to vector<32x256xf32>
    %70 = arith.mulf %68, %69 : vector<32x256xf32>
    %71 = vector.broadcast %50 : vector<32x1xf32> to vector<32x256xf32>
    %72 = arith.addf %70, %71 : vector<32x256xf32>
    %c0_34 = arith.constant 0 : index
    %c0_35 = arith.constant 0 : index
    %73 = vector.load %arg11[%c0_34, %c0_35] : memref<32x1xf32, #tpu.memory_space<vmem>>, vector<32x1xf32>
    %74 = vector.broadcast %73 : vector<32x1xf32> to vector<32x256xf32>
    %75 = arith.mulf %72, %74 : vector<32x256xf32>
    %cst_36 = arith.constant dense<0.000000e+00> : vector<256xf32>
    %76 = vector.multi_reduction <add>, %75, %cst_36 [0] : vector<32x256xf32> to vector<256xf32>
    %77 = vector.shape_cast %76 : vector<256xf32> to vector<1x256xf32>
    %c0_37 = arith.constant 0 : index
    %c0_38 = arith.constant 0 : index
    %78 = vector.load %arg12[%c0_37, %c0_38] : memref<1x1xf32, #tpu.memory_space<vmem>>, vector<1x1xf32>
    %79 = vector.broadcast %78 : vector<1x1xf32> to vector<1x256xf32>
    %80 = arith.addf %77, %79 : vector<1x256xf32>
    %c0_39 = arith.constant 0 : index
    %c0_40 = arith.constant 0 : index
    %81 = vector.load %arg13[%c0_39, %c0_40] : memref<1x256xf32, #tpu.memory_space<vmem>>, vector<1x256xf32>
    tpu.vector_store %arg13[%c0_39, %c0_40], %80 {strides = array<i32>} : memref<1x256xf32, #tpu.memory_space<vmem>>, vector<1x256xf32>,
    return
  }
  func.func @transform_0(%arg0: i32) -> (i32, i32) {
    %c0_i32 = arith.constant 0 : i32
    %c0_i32_0 = arith.constant 0 : i32
    return %c0_i32, %arg0 : i32, i32
  }
  func.func @transform_1(%arg0: i32) -> (i32, i32) {
    %c0_i32 = arith.constant 0 : i32
    %c0_i32_0 = arith.constant 0 : i32
    %c0_i32_1 = arith.constant 0 : i32
    return %c0_i32, %c0_i32_0 : i32, i32
  }
  func.func @transform_2(%arg0: i32) -> (i32, i32) {
    %c0_i32 = arith.constant 0 : i32
    %c0_i32_0 = arith.constant 0 : i32
    %c0_i32_1 = arith.constant 0 : i32
    return %c0_i32, %c0_i32_0 : i32, i32
  }
  func.func @transform_3(%arg0: i32) -> (i32, i32) {
    %c0_i32 = arith.constant 0 : i32
    %c0_i32_0 = arith.constant 0 : i32
    %c0_i32_1 = arith.constant 0 : i32
    return %c0_i32, %c0_i32_0 : i32, i32
  }
  func.func @transform_4(%arg0: i32) -> (i32, i32) {
    %c0_i32 = arith.constant 0 : i32
    %c0_i32_0 = arith.constant 0 : i32
    %c0_i32_1 = arith.constant 0 : i32
    return %c0_i32, %c0_i32_0 : i32, i32
  }
  func.func @transform_5(%arg0: i32) -> (i32, i32) {
    %c0_i32 = arith.constant 0 : i32
    %c0_i32_0 = arith.constant 0 : i32
    %c0_i32_1 = arith.constant 0 : i32
    return %c0_i32, %c0_i32_0 : i32, i32
  }
  func.func @transform_6(%arg0: i32) -> (i32, i32) {
    %c0_i32 = arith.constant 0 : i32
    %c0_i32_0 = arith.constant 0 : i32
    %c0_i32_1 = arith.constant 0 : i32
    return %c0_i32, %c0_i32_0 : i32, i32
  }
  func.func @transform_7(%arg0: i32) -> (i32, i32) {
    %c0_i32 = arith.constant 0 : i32
    %c0_i32_0 = arith.constant 0 : i32
    %c0_i32_1 = arith.constant 0 : i32
    return %c0_i32, %c0_i32_0 : i32, i32
  }
  func.func @transform_8(%arg0: i32) -> (i32, i32) {
    %c0_i32 = arith.constant 0 : i32
    %c0_i32_0 = arith.constant 0 : i32
    %c0_i32_1 = arith.constant 0 : i32
    return %c0_i32, %c0_i32_0 : i32, i32
  }
  func.func @transform_9(%arg0: i32) -> (i32, i32) {
    %c0_i32 = arith.constant 0 : i32
    %c0_i32_0 = arith.constant 0 : i32
    %c0_i32_1 = arith.constant 0 : i32
    return %c0_i32, %c0_i32_0 : i32, i32
  }
  func.func @transform_10(%arg0: i32) -> (i32, i32) {
    %c0_i32 = arith.constant 0 : i32
    %c0_i32_0 = arith.constant 0 : i32
    %c0_i32_1 = arith.constant 0 : i32
    return %c0_i32, %c0_i32_0 : i32, i32
  }
  func.func @transform_11(%arg0: i32) -> (i32, i32) {
    %c0_i32 = arith.constant 0 : i32
    %c0_i32_0 = arith.constant 0 : i32
    %c0_i32_1 = arith.constant 0 : i32
    return %c0_i32, %c0_i32_0 : i32, i32
  }
  func.func @transform_12(%arg0: i32) -> (i32, i32) {
    %c0_i32 = arith.constant 0 : i32
    %c0_i32_0 = arith.constant 0 : i32
    return %c0_i32, %arg0 : i32, i32
  }
}

</mosaic_0001>

<bundles_post_ra>
// kernel: tpu_custom_call.1
= control target key start
LH: loop header
LB: loop body
LE: loop exit
PB: predicated region body
PF: predicated region fallthrough
CT: control target
= control target key end

     0   :  { %s1488_s0 = inlined_call_operand.vmem [shape: f32[32,256], index: 0, kind: input, shape index: {}]   ;;  %s1489_s1 = inlined_call_operand.vmem [shape: f32[1,256], index: 1, kind: input, shape index: {}]   ;;  %s1490_s2 = inlined_call_operand.vmem [shape: f32[32,96], index: 2, kind: input, shape index: {}]   ;;  %s1491_s3 = inlined_call_operand.vmem [shape: f32[32,1], index: 3, kind: input, shape index: {}]   ;;  %s1492_s4 = inlined_call_operand.vmem [shape: f32[32,1], index: 4, kind: input, shape index: {}]   ;;  %s1493_s5 = inlined_call_operand.vmem [shape: f32[32,1], index: 5, kind: input, shape index: {}]   ;;  %s1494_s6 = inlined_call_operand.vmem [shape: f32[32,96], index: 6, kind: input, shape index: {}]   ;;  %s1495_s7 = inlined_call_operand.vmem [shape: f32[32,1], index: 7, kind: input, shape index: {}]   ;;  %s1496_s8 = inlined_call_operand.vmem [shape: f32[32,1], index: 8, kind: input, shape index: {}]   ;;  %s1497_s9 = inlined_call_operand.vmem [shape: f32[32,1], index: 9, kind: input, shape index: {}]   ;;  %s1498_s10 = inlined_call_operand.vmem [shape: f32[32,1], index: 10, kind: input, shape index: {}]   ;;  %s1499_s11 = inlined_call_operand.<no memory space> [shape: f32[1,1], index: 11, kind: input, shape index: {}]   ;;  %s1500_s12 = inlined_call_operand.hbm [shape: f32[1,256], index: 12, kind: output, shape index: {}]  }
   0x1   :  { %v17_v0 = vstv %s1499_s11 }
   0x2   :  { %18 = vst [vmem:[#allocation2] sm:$0x1] %v17_v0 }
   0x3   :  { %v52_v1 = vld [vmem:[%s1488_s0 + $0x20] sm:$0xff]  ;;  %v54_v2 = vld [vmem:[%s1488_s0 + $0x30] sm:$0xff]  ;;  %v53_v6 = vld [vmem:[%s1488_s0 + $0x28] sm:$0xff] }
   0x4   :  { %v48_v3 = vld [vmem:[%s1488_s0] sm:$0xff]  ;;  %v917_v4 = vpack.i.bf16 %v54_v2, %v52_v1  ;;  %v50_v5 = vld [vmem:[%s1488_s0 + $0x10] sm:$0xff]  ;;  %v55_v7 = vld [vmem:[%s1488_s0 + $0x38] sm:$0xff] }
   0x5   :  { %v907_v8 = vpack.i.bf16 %v50_v5, %v48_v3  ;;  %v49_v9 = vld [vmem:[%s1488_s0 + $0x8] sm:$0xff]  ;;  %v51_v10 = vld [vmem:[%s1488_s0 + $0x18] sm:$0xff] }
   0x6   :  { %19 = vsyncpa [#allocation4], 0  ;;  %s1041_s20 = smov 127   ;;  %v922_v11 = vpack.i.bf16 %v55_v7, %v53_v6  ;;  %v852_v12 = vpack.c.bf16 %v51_v10, %v49_v9  ;;  %v854_v13 = vpack.c.bf16 %v50_v5, %v48_v3  ;;  %v912_v14 = vpack.i.bf16 %v51_v10, %v49_v9  ;;  %s1042_s0 = smov 126   ;;  %v109_v18 = vld [vmem:[%s1491_s3 + $0x8] sm:$0xff]  ;;  %v108_v19 = vld [vmem:[%s1491_s3] sm:$0xff] }
   0x7   :  { %918 = vrot.lane.b32.xlu1 %v917_v4, %s1041_s20  ;;  %908 = vrot.lane.b32.xlu0 %v907_v8, %s1041_s20  ;;  %v856_v15 = vpack.c.bf16 %v55_v7, %v53_v6  ;;  %v858_v16 = vpack.c.bf16 %v54_v2, %v52_v1  ;;  %v1043_v17 = vmov 0.0   ;;  %v1044_v20 = vmov 0   ;;  %v110_v21 = vld [vmem:[%s1491_s3 + $0x10] sm:$0xff]  ;;  %v111_v22 = vld [vmem:[%s1491_s3 + $0x18] sm:$0xff] }
   0x8   :  { %853 = vmatprep.subr.bf16.mxu0 %v852_v12  ;;  %209 = vmatprep.mubr.f32.mxu0 %v1043_v17  ;;  %v242_v23 = vld [vmem:[%s1492_s4] sm:$0xff]  ;;  %v243_v24 = vld [vmem:[%s1492_s4 + $0x8] sm:$0xff]  ;;  %v244_v27 = vld [vmem:[%s1492_s4 + $0x10] sm:$0xff]  ;;  %v72_v31 = vlaneseq  ;;  %vm132_vm2 = vcmask 785408  }
   0x9   :  { %855 = vmatpush1.bf16.msra.mxu0 %v854_v13  ;;  %576 = vmatprep.mubr.f32.mxu1 %v1043_v17  ;;  %v246_v25 = vld [vmem:[%s1493_s5] sm:$0xff]  ;;  %v247_v26 = vld [vmem:[%s1493_s5 + $0x8] sm:$0xff]  ;;  %v245_v28 = vld [vmem:[%s1492_s4 + $0x18] sm:$0xff] }
   0xa   :  { %857 = vmatprep.subr.bf16.mxu0 %v856_v15  ;;  %948 = vset.pattern.permute.xlu1 %v1044_v20  ;;  %v248_v29 = vld [vmem:[%s1493_s5 + $0x10] sm:$0xff]  ;;  %v249_v30 = vld [vmem:[%s1493_s5 + $0x18] sm:$0xff]  ;;  %v1187_v33 = vand.u32 127, %v72_v31  ;;  %vm827_vm4 = vcmp.lt.s32.totalorder %v72_v31, 256 }
   0xb   :  { %923 = vrot.lane.b32.xlu1 %v922_v11, %s1041_s20  ;;  %913 = vrot.lane.b32.xlu0 %v912_v14, %s1041_s20 }
   0xc   :  { %947 = vset.pattern.permute.xlu0 %v1044_v20  ;;  %vm74_vm0 = vcmp.lt.s32.totalorder %v1187_v33, 127  ;;  %vm99_vm1 = vcmp.lt.s32.totalorder %v1187_v33, 126  ;;  %v46_v20 = vld [vmem:[%s1490_s2 + $0x10] sm:$0xff]  ;;  %vm415_vm3 = vcmp.lt.s32.totalorder %v1187_v33, 1 }
   0xd   :  { %859 = vmatpush1.bf16.msra.mxu0 %v858_v16  ;;  %v426_v33 = vld [vmem:[%s1494_s6 + $0x10] sm:$0xff] }
   0xf   :  { %933 = vrot.lane.b32.xlu1 %v912_v14, %s1042_s0  ;;  %928 = vrot.lane.b32.xlu0 %v907_v8, %s1042_s0 }
  0x13   :  { %943 = vrot.lane.b32.xlu1 %v922_v11, %s1042_s0  ;;  %938 = vrot.lane.b32.xlu0 %v917_v4, %s1042_s0 }
  0x17   :  { %119 = vperm.xlu1 %948, %v109_v18   ;;  %114 = vperm.xlu0 %947, %v108_v19   ;;  %v44_v18 = vld [vmem:[%s1490_s2] sm:$0xff]  ;;  %v45_v19 = vld [vmem:[%s1490_s2 + $0x8] sm:$0xff] }
  0x1b   :  { %124 = vperm.xlu1 %948, %v110_v21   ;;  %129 = vperm.xlu0 %947, %v111_v22   ;;  %v47_v21 = vld [vmem:[%s1490_s2 + $0x18] sm:$0xff] }
  0x1f   :  { %325 = vperm.xlu1 %948, %v242_v23   ;;  %330 = vperm.xlu0 %947, %v243_v24  }
  0x23   :  { %353 = vperm.xlu1 %948, %v246_v25   ;;  %358 = vperm.xlu0 %947, %v247_v26  }
  0x27   :  { %335 = vperm.xlu1 %948, %v244_v27   ;;  %340 = vperm.xlu0 %947, %v245_v28  }
  0x2b   :  { %363 = vperm.xlu1 %948, %v248_v29   ;;  %368 = vperm.xlu0 %947, %v249_v30  }
  0x79   :  { %v919_v32 = vpop.permute.xlu1 %918  ;;  %v909_v34 = vpop.permute.xlu0 %908 }
  0x7a   :  { %v921_v35 = vunpack.i.h.bf16 %v919_v32  ;;  %v920_v36 = vunpack.i.l.bf16 %v919_v32  ;;  %v911_v41 = vunpack.i.h.bf16 %v909_v34  ;;  %v910_v42 = vunpack.i.l.bf16 %v909_v34 }
  0x7d   :  { %v924_v37 = vpop.permute.xlu1 %923  ;;  %v914_v40 = vpop.permute.xlu0 %913 }
  0x7e   :  { %v926_v38 = vunpack.i.h.bf16 %v924_v37  ;;  %v925_v39 = vunpack.i.l.bf16 %v924_v37  ;;  %v916_v43 = vunpack.i.h.bf16 %v914_v40  ;;  %v915_v44 = vunpack.i.l.bf16 %v914_v40 }
  0x80   :  { %v81_v45 = vsel %vm74_vm0, %v925_v39, %v920_v36  ;;  %v82_v46 = vsel %vm74_vm0, %v926_v38, %v921_v35  ;;  %v79_v47 = vsel %vm74_vm0, %v915_v44, %v910_v42  ;;  %v80_v48 = vsel %vm74_vm0, %v916_v43, %v911_v41 }
  0x81   :  { %v75_v49 = vsel %vm74_vm0, %v910_v42, %v915_v44  ;;  %v76_v50 = vsel %vm74_vm0, %v911_v41, %v916_v43  ;;  %v934_v51 = vpop.permute.xlu1 %933  ;;  %v860_v52 = vpack.c.bf16 %v80_v48, %v79_v47  ;;  %v929_v56 = vpop.permute.xlu0 %928  ;;  %v864_v59 = vpack.c.bf16 %v82_v46, %v81_v45 }
  0x82   :  { %v862_v53 = vpack.c.bf16 %v76_v50, %v75_v49  ;;  %v936_v54 = vunpack.i.h.bf16 %v934_v51  ;;  %v935_v55 = vunpack.i.l.bf16 %v934_v51  ;;  %v931_v57 = vunpack.i.h.bf16 %v929_v56 }
  0x83   :  { %v930_v58 = vunpack.i.l.bf16 %v929_v56  ;;  %861 = vmatprep.subr.bf16.mxu0 %v860_v52  ;;  %v77_v60 = vsel %vm74_vm0, %v920_v36, %v925_v39  ;;  %v78_v61 = vsel %vm74_vm0, %v921_v35, %v926_v38 }
  0x84   :  { %863 = vmatpush1.bf16.msra.mxu0 %v862_v53  ;;  %v105_v0 = vsel %vm99_vm1, %v936_v54, %v931_v57  ;;  %v101_v6 = vsel %vm99_vm1, %v931_v57, %v936_v54  ;;  %v866_v7 = vpack.c.bf16 %v78_v61, %v77_v60 }
  0x85   :  { %v944_v62 = vpop.permute.xlu1 %943  ;;  %v104_v63 = vsel %vm99_vm1, %v935_v55, %v930_v58  ;;  %v100_v1 = vsel %vm99_vm1, %v930_v58, %v935_v55  ;;  %865 = vmatprep.subr.bf16.mxu0 %v864_v59  ;;  %v939_v4 = vpop.permute.xlu0 %938 }
  0x86   :  { %v946_v2 = vunpack.i.h.bf16 %v944_v62  ;;  %v945_v3 = vunpack.i.l.bf16 %v944_v62  ;;  %v868_v5 = vpack.c.bf16 %v105_v0, %v104_v63  ;;  %v941_v8 = vunpack.i.h.bf16 %v939_v4 }
  0x87   :  { %v940_v9 = vunpack.i.l.bf16 %v939_v4  ;;  %v870_v10 = vpack.c.bf16 %v101_v6, %v100_v1 }
  0x88   :  { %867 = vmatpush1.bf16.msra.mxu0 %v866_v7  ;;  %v107_v12 = vsel %vm99_vm1, %v946_v2, %v941_v8  ;;  %v103_v15 = vsel %vm99_vm1, %v941_v8, %v946_v2 }
  0x89   :  { %v106_v11 = vsel %vm99_vm1, %v945_v3, %v940_v9  ;;  %869 = vmatprep.subr.bf16.mxu0 %v868_v5  ;;  %v102_v14 = vsel %vm99_vm1, %v940_v9, %v945_v3 }
  0x8a   :  { %v872_v13 = vpack.c.bf16 %v107_v12, %v106_v11  ;;  %v874_v16 = vpack.c.bf16 %v103_v15, %v102_v14 }
  0x8c   :  { %871 = vmatpush1.bf16.msra.mxu0 %v870_v10 }
  0x8d   :  { %873 = vmatprep.subr.bf16.mxu0 %v872_v13 }
  0x90   :  { %875 = vmatpush1.bf16.msra.mxu0 %v874_v16 }
  0x93   :  { %844 = vmatmul.mubr.msk.f32.vlgmr.msra.gmra.mrb[0].mxu0 %vm132_vm2, %v44_v18 }
  0x94   :  { %215 = vmatprep.mubr.f32.mxu0 %v1043_v17 }
  0x96   :  { %v115_v22 = vpop.permute.xlu0 %114  ;;  %v120_v26 = vpop.permute.xlu1 %119 }
  0x97   :  { %845 = vmatmul.mubr.msk.f32.gmra.mrb[2].mxu0 %vm132_vm2, %v45_v19 }
  0x98   :  { %221 = vmatprep.mubr.f32.mxu0 %v1043_v17 }
  0x9a   :  { %v125_v37 = vpop.permute.xlu1 %124  ;;  %v130_v51 = vpop.permute.xlu0 %129 }
  0x9b   :  { %846 = vmatmul.mubr.msk.f32.gmra.mrb[4].mxu0 %vm132_vm2, %v46_v20 }
  0x9c   :  { %227 = vmatprep.mubr.f32.mxu0 %v1043_v17 }
  0x9f   :  { %847 = vmatmul.mubr.msk.f32.gmra.mrb[6].mxu0 %vm132_vm2, %v47_v21 }
 0x166   :  { %v211_v23 = vpop.f32.mrb[0].mxu0 }
 0x167   :  { %v212_v24 = vadd.f32 %v211_v23, %v115_v22  ;;  %v213_v25 = vpop.f32.mrb[1].mxu0 }
 0x168   :  { %v214_v27 = vadd.f32 %v213_v25, %v115_v22 }
 0x169   :  { %v1242_v29 = vmax.f32 %v212_v24, 0.0 }
 0x16a   :  { %v217_v28 = vpop.f32.mrb[2].mxu0  ;;  %v1244_v34 = vmax.f32 %v214_v27, 0.0 }
 0x16b   :  { %v218_v30 = vadd.f32 %v217_v28, %v120_v26  ;;  %v219_v32 = vpop.f32.mrb[3].mxu0  ;;  %v271_v40 = vmul.f32 %v1242_v29, %v1242_v29 }
 0x16c   :  { %v220_v35 = vadd.f32 %v219_v32, %v120_v26  ;;  %v272_v45 = vmul.f32 %v1244_v34, %v1244_v34 }
 0x16d   :  { %v1246_v36 = vmax.f32 %v218_v30, 0.0 }
 0x16e   :  { %v1248_v38 = vmax.f32 %v220_v35, 0.0  ;;  %v223_v39 = vpop.f32.mrb[4].mxu0 }
 0x16f   :  { %v250_v41 = vadd.f32 %v1246_v36, %v1242_v29  ;;  %v273_v42 = vmul.f32 %v1246_v36, %v1246_v36  ;;  %v224_v43 = vadd.f32 %v223_v39, %v125_v37  ;;  %v225_v44 = vpop.f32.mrb[5].mxu0 }
 0x170   :  { %v259_v46 = vadd.f32 %v1248_v38, %v1244_v34  ;;  %v274_v47 = vmul.f32 %v1248_v38, %v1248_v38  ;;  %v226_v48 = vadd.f32 %v225_v44, %v125_v37 }
 0x171   :  { %v279_v49 = vadd.f32 %v273_v42, %v271_v40  ;;  %v1262_v50 = vmax.f32 %v224_v43, 0.0 }
 0x172   :  { %v288_v52 = vadd.f32 %v274_v47, %v272_v45  ;;  %v1264_v53 = vmax.f32 %v226_v48, 0.0  ;;  %v229_v54 = vpop.f32.mrb[6].mxu0 }
 0x173   :  { %v251_v55 = vadd.f32 %v250_v41, %v1262_v50  ;;  %v275_v56 = vmul.f32 %v1262_v50, %v1262_v50  ;;  %v230_v57 = vadd.f32 %v229_v54, %v130_v51  ;;  %v231_v58 = vpop.f32.mrb[7].mxu0 }
 0x174   :  { %v260_v59 = vadd.f32 %v259_v46, %v1264_v53  ;;  %v276_v60 = vmul.f32 %v1264_v53, %v1264_v53  ;;  %v232_v61 = vadd.f32 %v231_v58, %v130_v51  ;;  %v331_v51 = vpop.permute.xlu0 %330 }
 0x175   :  { %v280_v62 = vadd.f32 %v279_v49, %v275_v56  ;;  %v1272_v63 = vmax.f32 %v230_v57, 0.0  ;;  %v326_v49 = vpop.permute.xlu1 %325 }
 0x176   :  { %v289_v0 = vadd.f32 %v288_v52, %v276_v60  ;;  %v1274_v1 = vmax.f32 %v232_v61, 0.0 }
 0x177   :  { %v252_v2 = vadd.f32 %v251_v55, %v1272_v63  ;;  %v277_v3 = vmul.f32 %v1272_v63, %v1272_v63 }
 0x178   :  { %v261_v4 = vadd.f32 %v260_v59, %v1274_v1  ;;  %v278_v5 = vmul.f32 %v1274_v1, %v1274_v1  ;;  %v359_v61 = vpop.permute.xlu0 %358 }
 0x179   :  { %v253_v6 = vrot.slane %v252_v2, 4  ;;  %v281_v7 = vadd.f32 %v280_v62, %v277_v3  ;;  %v354_v60 = vpop.permute.xlu1 %353 }
 0x17a   :  { %v262_v8 = vrot.slane %v261_v4, 4  ;;  %v290_v9 = vadd.f32 %v289_v0, %v278_v5 }
 0x17b   :  { %v254_v10 = vadd.f32 %v253_v6, %v252_v2  ;;  %v282_v11 = vrot.slane %v281_v7, 4 }
 0x17c   :  { %v263_v12 = vadd.f32 %v262_v8, %v261_v4  ;;  %v291_v13 = vrot.slane %v290_v9, 4 }
 0x17d   :  { %v255_v14 = vrot.slane %v254_v10, 2  ;;  %v283_v15 = vadd.f32 %v282_v11, %v281_v7 }
 0x17e   :  { %v264_v16 = vrot.slane %v263_v12, 2  ;;  %v292_v18 = vadd.f32 %v291_v13, %v290_v9 }
 0x17f   :  { %v256_v19 = vadd.f32 %v255_v14, %v254_v10  ;;  %v284_v20 = vrot.slane %v283_v15, 2 }
 0x180   :  { %v265_v21 = vadd.f32 %v264_v16, %v263_v12  ;;  %v293_v22 = vrot.slane %v292_v18, 2 }
 0x181   :  { %v257_v23 = vrot.slane %v256_v19, 1  ;;  %v285_v24 = vadd.f32 %v284_v20, %v283_v15 }
 0x182   :  { %v266_v25 = vrot.slane %v265_v21, 1  ;;  %v294_v26 = vadd.f32 %v293_v22, %v292_v18 }
 0x183   :  { %v258_v27 = vadd.f32 %v257_v23, %v256_v19  ;;  %v286_v28 = vrot.slane %v285_v24, 1 }
 0x184   :  { %v267_v30 = vadd.f32 %v266_v25, %v265_v21  ;;  %v295_v32 = vrot.slane %v294_v26, 1 }
 0x185   :  { %v269_v35 = vmul.f32 0.03125, %v258_v27  ;;  %v287_v37 = vadd.f32 %v286_v28, %v285_v24 }
 0x186   :  { %v270_v39 = vmul.f32 0.03125, %v267_v30  ;;  %v296_v40 = vadd.f32 %v295_v32, %v294_v26 }
 0x187   :  { %v297_v41 = vmul.f32 0.03125, %v287_v37  ;;  %v299_v42 = vmul.f32 %v269_v35, %v269_v35  ;;  %v309_v43 = vsub.f32 %v1272_v63, %v269_v35  ;;  %v303_v44 = vsub.f32 %v1242_v29, %v269_v35  ;;  %v341_v63 = vpop.permute.xlu0 %340 }
 0x188   :  { %v298_v45 = vmul.f32 0.03125, %v296_v40  ;;  %v300_v46 = vmul.f32 %v270_v39, %v270_v39  ;;  %v310_v47 = vsub.f32 %v1274_v1, %v270_v39  ;;  %v305_v48 = vsub.f32 %v1246_v36, %v269_v35 }
 0x189   :  { %v301_v52 = vsub.f32 %v297_v41, %v299_v42  ;;  %v304_v54 = vsub.f32 %v1244_v34, %v270_v39  ;;  %v306_v55 = vsub.f32 %v1248_v38, %v270_v39  ;;  %v307_v56 = vsub.f32 %v1262_v50, %v269_v35  ;;  %v379_v38 = vld [vmem:[%s1489_s1] sm:$0x3]  ;;  %v336_v50 = vpop.permute.xlu1 %335  ;;  %s1045_s1 = smov 1  }
 0x18a   :  { %v302_v57 = vsub.f32 %v298_v45, %v300_v46  ;;  %v308_v58 = vsub.f32 %v1264_v53, %v270_v39  ;;  %v1291_v36 = vshrl.u32 %v72_v31, 7 }
 0x18b   :  { %v311_v59 = vadd.f32 1e-05, %v301_v52  ;;  %v369_v16 = vpop.permute.xlu0 %368 }
 0x18c   :  { %v312_v29 = vadd.f32 1e-05, %v302_v57  ;;  %v383_v62 = vsub.s32 0, %v1291_v36  ;;  %v387_v34 = vsub.s32 1, %v1291_v36 }
 0x18d   :  { %1009 = vrsqrt.f32 %v311_v59  ;;  %v364_v15 = vpop.permute.xlu1 %363 }
 0x18e   :  { %1011 = vrsqrt.f32 %v312_v29  ;;  %v384_v0 = vrot.slane %v379_v38, %v383_v62  ;;  %v388_v1 = vrot.slane %v379_v38, %v387_v34 }
 0x197   :  { %v1010_v53 = vpop.eup %1009 }
 0x198   :  { %v1012_v2 = vpop.eup %1011  ;;  %v321_v3 = vmul.f32 %v1010_v53, %v309_v43  ;;  %v315_v4 = vmul.f32 %v1010_v53, %v303_v44  ;;  %v317_v5 = vmul.f32 %v1010_v53, %v305_v48  ;;  %v319_v6 = vmul.f32 %v1010_v53, %v307_v56 }
 0x199   :  { %v322_v7 = vmul.f32 %v1012_v2, %v310_v47  ;;  %v316_v8 = vmul.f32 %v1012_v2, %v304_v54  ;;  %v318_v9 = vmul.f32 %v1012_v2, %v306_v55  ;;  %v320_v10 = vmul.f32 %v1012_v2, %v308_v58 }
 0x19a   :  { %v349_v11 = vmul.f32 %v341_v63, %v321_v3  ;;  %v343_v12 = vmul.f32 %v326_v49, %v315_v4  ;;  %v345_v13 = vmul.f32 %v331_v51, %v317_v5  ;;  %v347_v14 = vmul.f32 %v336_v50, %v319_v6 }
 0x19b   :  { %v350_v18 = vmul.f32 %v341_v63, %v322_v7  ;;  %v344_v19 = vmul.f32 %v326_v49, %v316_v8  ;;  %v346_v20 = vmul.f32 %v331_v51, %v318_v9  ;;  %v348_v21 = vmul.f32 %v336_v50, %v320_v10  ;;  %v476_v10 = vld [vmem:[%s1495_s7] sm:$0xff] }
 0x19c   :  { %v371_v22 = vadd.f32 %v354_v60, %v343_v12  ;;  %v373_v23 = vadd.f32 %v359_v61, %v345_v13  ;;  %v375_v24 = vadd.f32 %v364_v15, %v347_v14  ;;  %v377_v25 = vadd.f32 %v369_v16, %v349_v11  ;;  %v477_v11 = vld [vmem:[%s1495_s7 + $0x8] sm:$0xff]  ;;  %v478_v12 = vld [vmem:[%s1495_s7 + $0x10] sm:$0xff]  ;;  %v479_v13 = vld [vmem:[%s1495_s7 + $0x18] sm:$0xff] }
 0x19d   :  { %v372_v26 = vadd.f32 %v354_v60, %v344_v19  ;;  %v374_v27 = vadd.f32 %v359_v61, %v346_v20  ;;  %v376_v28 = vadd.f32 %v364_v15, %v348_v21  ;;  %v378_v30 = vadd.f32 %v369_v16, %v350_v18  ;;  %v609_v14 = vld [vmem:[%s1496_s8] sm:$0xff]  ;;  %v610_v15 = vld [vmem:[%s1496_s8 + $0x8] sm:$0xff]  ;;  %v611_v16 = vld [vmem:[%s1496_s8 + $0x10] sm:$0xff] }
 0x19e   :  { %v391_v32 = vmul.f32 %v384_v0, %v371_v22  ;;  %v393_v35 = vmul.f32 %v384_v0, %v373_v23  ;;  %v395_v37 = vmul.f32 %v384_v0, %v375_v24  ;;  %v397_v39 = vmul.f32 %v384_v0, %v377_v25  ;;  %v613_v18 = vld [vmem:[%s1497_s9] sm:$0xff]  ;;  %v614_v19 = vld [vmem:[%s1497_s9 + $0x8] sm:$0xff]  ;;  %v612_v20 = vld [vmem:[%s1496_s8 + $0x18] sm:$0xff] }
 0x19f   :  { %v392_v40 = vmul.f32 %v388_v1, %v372_v26  ;;  %v394_v41 = vmul.f32 %v388_v1, %v374_v27  ;;  %v396_v42 = vmul.f32 %v388_v1, %v376_v28  ;;  %v398_v43 = vmul.f32 %v388_v1, %v378_v30  ;;  %v615_v21 = vld [vmem:[%s1497_s9 + $0x10] sm:$0xff]  ;;  %v745_v22 = vld [vmem:[%s1498_s10] sm:$0xff]  ;;  %v746_v23 = vld [vmem:[%s1498_s10 + $0x8] sm:$0xff] }
 0x1a0   :  { %v949_v44 = vpack.i.bf16 %v393_v35, %v391_v32  ;;  %v954_v45 = vpack.i.bf16 %v397_v39, %v395_v37  ;;  %v616_v24 = vld [vmem:[%s1497_s9 + $0x18] sm:$0xff]  ;;  %v747_v25 = vld [vmem:[%s1498_s10 + $0x10] sm:$0xff]  ;;  %v795_v27 = vld [vmem:[#allocation2] sm:$0x1] }
 0x1a1   :  { %v959_v46 = vpack.i.bf16 %v394_v41, %v392_v40  ;;  %v964_v47 = vpack.i.bf16 %v398_v43, %v396_v42  ;;  %v748_v26 = vld [vmem:[%s1498_s10 + $0x18] sm:$0xff] }
 0x1a2   :  { %950 = vrot.lane.b32.xlu1 %v949_v44, %s1045_s1 }
 0x1a3   :  { %960 = vrot.lane.b32.xlu0 %v959_v46, %s1045_s1 }
 0x1a6   :  { %955 = vrot.lane.b32.xlu1 %v954_v45, %s1045_s1 }
 0x1a7   :  { %965 = vrot.lane.b32.xlu0 %v964_v47, %s1045_s1 }
 0x214   :  { %v951_v48 = vpop.permute.xlu1 %950 }
 0x215   :  { %v953_v49 = vunpack.i.h.bf16 %v951_v48  ;;  %v952_v51 = vunpack.i.l.bf16 %v951_v48  ;;  %v961_v52 = vpop.permute.xlu0 %960 }
 0x216   :  { %v963_v54 = vunpack.i.h.bf16 %v961_v52  ;;  %v962_v55 = vunpack.i.l.bf16 %v961_v52 }
 0x218   :  { %v956_v56 = vpop.permute.xlu1 %955  ;;  %v420_v57 = vsel %vm415_vm3, %v962_v55, %v952_v51  ;;  %v421_v58 = vsel %vm415_vm3, %v963_v54, %v953_v49  ;;  %v416_v59 = vsel %vm415_vm3, %v952_v51, %v962_v55  ;;  %v417_v29 = vsel %vm415_vm3, %v953_v49, %v963_v54 }
 0x219   :  { %v958_v60 = vunpack.i.h.bf16 %v956_v56  ;;  %v957_v61 = vunpack.i.l.bf16 %v956_v56  ;;  %v966_v34 = vpop.permute.xlu0 %965  ;;  %v969_v38 = vpack.i.bf16 %v421_v58, %v420_v57  ;;  %v974_v50 = vpack.i.bf16 %v417_v29, %v416_v59 }
 0x21a   :  { %v968_v63 = vunpack.i.h.bf16 %v966_v34  ;;  %v967_v53 = vunpack.i.l.bf16 %v966_v34  ;;  %v876_v0 = vpack.c.bf16 %v417_v29, %v416_v59  ;;  %v878_v1 = vpack.c.bf16 %v421_v58, %v420_v57 }
 0x21b   :  { %970 = vrot.lane.b32.xlu1 %v969_v38, %s1041_s20  ;;  %975 = vrot.lane.b32.xlu0 %v974_v50, %s1041_s20 }
 0x21c   :  { %877 = vmatprep.subr.bf16.mxu1 %v876_v0  ;;  %v422_v2 = vsel %vm415_vm3, %v967_v53, %v957_v61  ;;  %v423_v3 = vsel %vm415_vm3, %v968_v63, %v958_v60  ;;  %v418_v4 = vsel %vm415_vm3, %v957_v61, %v967_v53  ;;  %v419_v5 = vsel %vm415_vm3, %v958_v60, %v968_v63 }
 0x21d   :  { %879 = vmatpush1.bf16.msra.mxu1 %v878_v1  ;;  %v979_v6 = vpack.i.bf16 %v423_v3, %v422_v2  ;;  %v984_v7 = vpack.i.bf16 %v419_v5, %v418_v4  ;;  %v880_v8 = vpack.c.bf16 %v419_v5, %v418_v4  ;;  %v882_v9 = vpack.c.bf16 %v423_v3, %v422_v2 }
 0x21f   :  { %980 = vrot.lane.b32.xlu1 %v979_v6, %s1041_s20  ;;  %985 = vrot.lane.b32.xlu0 %v984_v7, %s1041_s20 }
 0x220   :  { %881 = vmatprep.subr.bf16.mxu1 %v880_v8 }
 0x221   :  { %883 = vmatpush1.bf16.msra.mxu1 %v882_v9 }
 0x223   :  { %990 = vrot.lane.b32.xlu1 %v969_v38, %s1042_s0  ;;  %995 = vrot.lane.b32.xlu0 %v974_v50, %s1042_s0 }
 0x227   :  { %1000 = vrot.lane.b32.xlu1 %v979_v6, %s1042_s0  ;;  %1005 = vrot.lane.b32.xlu0 %v984_v7, %s1042_s0 }
 0x22b   :  { %482 = vperm.xlu1 %948, %v476_v10   ;;  %487 = vperm.xlu0 %947, %v477_v11  }
 0x22f   :  { %492 = vperm.xlu1 %948, %v478_v12   ;;  %497 = vperm.xlu0 %947, %v479_v13  }
 0x233   :  { %691 = vperm.xlu1 %948, %v609_v14   ;;  %696 = vperm.xlu0 %947, %v610_v15  }
 0x237   :  { %701 = vperm.xlu1 %948, %v611_v16   ;;  %719 = vperm.xlu0 %947, %v613_v18   ;;  %v424_v16 = vld [vmem:[%s1494_s6] sm:$0xff]  ;;  %v425_v18 = vld [vmem:[%s1494_s6 + $0x8] sm:$0xff] }
 0x23b   :  { %724 = vperm.xlu1 %948, %v614_v19   ;;  %706 = vperm.xlu0 %947, %v612_v20   ;;  %v427_v19 = vld [vmem:[%s1494_s6 + $0x18] sm:$0xff]  ;;  %s1047_s6 = smov [#allocation3]  }
 0x23c   :  { %s836_s23 = sshll.u32 %s1047_s6, 4  ;;  %s837_s23 = int_to_ptr.vmem [resolvable:$true] %s836_s23 }
 0x23d   :  { %s1017_s24 = scalar_lea.vmem %s837_s23, 32  ;;  %p1022_p1 = scmp.lt.s32.totalorder %s837_s23, %s837_s23 }
 0x23e   :  { %p1018_p0 = scmp.ne.s32.totalorder %s837_s23, %s1017_s24  ;;  %p1023_p2 = scmp.lt.s32.totalorder %s1017_s24, %s1017_s24 }
 0x23f   :  { %729 = vperm.xlu1 %948, %v615_v21   ;;  %751 = vperm.xlu0 %947, %v745_v22  }
 0x240   :  { %p1024_p3 = por %p1023_p2, %p1022_p1 }
 0x242   :  { %p1025_p4 = pnand %p1024_p3, %p1018_p0 }
 0x243   :  { %756 = vperm.xlu1 %948, %v746_v23   ;;  %734 = vperm.xlu0 %947, %v616_v24  }
 0x247   :  { %761 = vperm.xlu1 %948, %v747_v25   ;;  %766 = vperm.xlu0 %947, %v748_v26  }
 0x24b   :  { %798 = vperm.xlu1 %948, %v795_v27  }
 0x28d   :  { %v971_v28 = vpop.permute.xlu1 %970  ;;  %v976_v30 = vpop.permute.xlu0 %975 }
 0x28e   :  { %v973_v32 = vunpack.i.h.bf16 %v971_v28  ;;  %v972_v35 = vunpack.i.l.bf16 %v971_v28  ;;  %v978_v37 = vunpack.i.h.bf16 %v976_v30  ;;  %v977_v39 = vunpack.i.l.bf16 %v976_v30 }
 0x290   :  { %v448_v40 = vsel %vm74_vm0, %v977_v39, %v972_v35  ;;  %v449_v41 = vsel %vm74_vm0, %v978_v37, %v973_v32  ;;  %v444_v42 = vsel %vm74_vm0, %v972_v35, %v977_v39  ;;  %v445_v43 = vsel %vm74_vm0, %v973_v32, %v978_v37 }
 0x291   :  { %v981_v44 = vpop.permute.xlu1 %980  ;;  %v986_v45 = vpop.permute.xlu0 %985  ;;  %v884_v46 = vpack.c.bf16 %v449_v41, %v448_v40  ;;  %v886_v47 = vpack.c.bf16 %v445_v43, %v444_v42 }
 0x292   :  { %v983_v48 = vunpack.i.h.bf16 %v981_v44  ;;  %v982_v49 = vunpack.i.l.bf16 %v981_v44  ;;  %v988_v51 = vunpack.i.h.bf16 %v986_v45  ;;  %v987_v52 = vunpack.i.l.bf16 %v986_v45 }
 0x293   :  { %885 = vmatprep.subr.bf16.mxu1 %v884_v46 }
 0x294   :  { %887 = vmatpush1.bf16.msra.mxu1 %v886_v47  ;;  %v450_v54 = vsel %vm74_vm0, %v987_v52, %v982_v49  ;;  %v451_v55 = vsel %vm74_vm0, %v988_v51, %v983_v48  ;;  %v446_v56 = vsel %vm74_vm0, %v982_v49, %v987_v52  ;;  %v447_v57 = vsel %vm74_vm0, %v983_v48, %v988_v51 }
 0x295   :  { %v991_v58 = vpop.permute.xlu1 %990  ;;  %v996_v59 = vpop.permute.xlu0 %995  ;;  %v888_v29 = vpack.c.bf16 %v451_v55, %v450_v54  ;;  %v890_v60 = vpack.c.bf16 %v447_v57, %v446_v56 }
 0x296   :  { %v993_v61 = vunpack.i.h.bf16 %v991_v58  ;;  %v992_v34 = vunpack.i.l.bf16 %v991_v58  ;;  %v998_v38 = vunpack.i.h.bf16 %v996_v59  ;;  %v997_v50 = vunpack.i.l.bf16 %v996_v59 }
 0x297   :  { %889 = vmatprep.subr.bf16.mxu1 %v888_v29 }
 0x298   :  { %891 = vmatpush1.bf16.msra.mxu1 %v890_v60  ;;  %v472_v63 = vsel %vm99_vm1, %v997_v50, %v992_v34  ;;  %v473_v53 = vsel %vm99_vm1, %v998_v38, %v993_v61  ;;  %v468_v0 = vsel %vm99_vm1, %v992_v34, %v997_v50  ;;  %v469_v1 = vsel %vm99_vm1, %v993_v61, %v998_v38 }
 0x299   :  { %v1001_v2 = vpop.permute.xlu1 %1000  ;;  %v1006_v3 = vpop.permute.xlu0 %1005  ;;  %v892_v4 = vpack.c.bf16 %v473_v53, %v472_v63  ;;  %v894_v5 = vpack.c.bf16 %v469_v1, %v468_v0 }
 0x29a   :  { %v1003_v6 = vunpack.i.h.bf16 %v1001_v2  ;;  %v1002_v7 = vunpack.i.l.bf16 %v1001_v2  ;;  %v1008_v8 = vunpack.i.h.bf16 %v1006_v3  ;;  %v1007_v9 = vunpack.i.l.bf16 %v1006_v3 }
 0x29b   :  { %893 = vmatprep.subr.bf16.mxu1 %v892_v4 }
 0x29c   :  { %895 = vmatpush1.bf16.msra.mxu1 %v894_v5  ;;  %v474_v10 = vsel %vm99_vm1, %v1007_v9, %v1002_v7  ;;  %v475_v11 = vsel %vm99_vm1, %v1008_v8, %v1003_v6  ;;  %v470_v12 = vsel %vm99_vm1, %v1002_v7, %v1007_v9  ;;  %v471_v13 = vsel %vm99_vm1, %v1003_v6, %v1008_v8 }
 0x29d   :  { %v896_v14 = vpack.c.bf16 %v475_v11, %v474_v10  ;;  %v898_v15 = vpack.c.bf16 %v471_v13, %v470_v12 }
 0x29f   :  { %897 = vmatprep.subr.bf16.mxu1 %v896_v14 }
 0x2a0   :  { %899 = vmatpush1.bf16.msra.mxu1 %v898_v15 }
 0x2a3   :  { %848 = vmatmul.mubr.msk.f32.vlgmr.msra.gmra.mrb[0].mxu1 %vm132_vm2, %v424_v16 }
 0x2a4   :  { %582 = vmatprep.mubr.f32.mxu1 %v1043_v17 }
 0x2a7   :  { %849 = vmatmul.mubr.msk.f32.gmra.mrb[2].mxu1 %vm132_vm2, %v425_v18 }
 0x2a8   :  { %588 = vmatprep.mubr.f32.mxu1 %v1043_v17 }
 0x2aa   :  { %v483_v20 = vpop.permute.xlu1 %482  ;;  %v488_v25 = vpop.permute.xlu0 %487 }
 0x2ab   :  { %850 = vmatmul.mubr.msk.f32.gmra.mrb[4].mxu1 %vm132_vm2, %v426_v33 }
 0x2ac   :  { %594 = vmatprep.mubr.f32.mxu1 %v1043_v17 }
 0x2ae   :  { %v493_v37 = vpop.permute.xlu1 %492  ;;  %v498_v54 = vpop.permute.xlu0 %497 }
 0x2af   :  { %851 = vmatmul.mubr.msk.f32.gmra.mrb[6].mxu1 %vm132_vm2, %v427_v19 }
 0x376   :  { %v578_v21 = vpop.f32.mrb[0].mxu1 }
 0x377   :  { %v579_v22 = vadd.f32 %v578_v21, %v483_v20  ;;  %v580_v23 = vpop.f32.mrb[1].mxu1  ;;  %v692_v21 = vpop.permute.xlu1 %691 }
 0x378   :  { %v581_v24 = vadd.f32 %v580_v23, %v483_v20 }
 0x379   :  { %v1424_v27 = vmax.f32 %v579_v22, 0.0 }
 0x37a   :  { %v584_v26 = vpop.f32.mrb[2].mxu1  ;;  %v1426_v32 = vmax.f32 %v581_v24, 0.0 }
 0x37b   :  { %v585_v28 = vadd.f32 %v584_v26, %v488_v25  ;;  %v586_v30 = vpop.f32.mrb[3].mxu1  ;;  %v637_v41 = vmul.f32 %v1424_v27, %v1424_v27  ;;  %v697_v26 = vpop.permute.xlu0 %696 }
 0x37c   :  { %v587_v17 = vadd.f32 %v586_v30, %v488_v25  ;;  %v638_v46 = vmul.f32 %v1426_v32, %v1426_v32 }
 0x37d   :  { %v1428_v35 = vmax.f32 %v585_v28, 0.0 }
 0x37e   :  { %v1430_v39 = vmax.f32 %v587_v17, 0.0  ;;  %v590_v40 = vpop.f32.mrb[4].mxu1 }
 0x37f   :  { %v617_v42 = vadd.f32 %v1428_v35, %v1424_v27  ;;  %v639_v43 = vmul.f32 %v1428_v35, %v1428_v35  ;;  %v591_v44 = vadd.f32 %v590_v40, %v493_v37  ;;  %v592_v45 = vpop.f32.mrb[5].mxu1 }
 0x380   :  { %v626_v47 = vadd.f32 %v1430_v39, %v1426_v32  ;;  %v640_v48 = vmul.f32 %v1430_v39, %v1430_v39  ;;  %v593_v49 = vadd.f32 %v592_v45, %v493_v37 }
 0x381   :  { %v645_v51 = vadd.f32 %v639_v43, %v637_v41  ;;  %v1444_v52 = vmax.f32 %v591_v44, 0.0  ;;  %v702_v44 = vpop.permute.xlu1 %701 }
 0x382   :  { %v654_v55 = vadd.f32 %v640_v48, %v638_v46  ;;  %v1446_v56 = vmax.f32 %v593_v49, 0.0  ;;  %v596_v57 = vpop.f32.mrb[6].mxu1 }
 0x383   :  { %v618_v58 = vadd.f32 %v617_v42, %v1444_v52  ;;  %v641_v59 = vmul.f32 %v1444_v52, %v1444_v52  ;;  %v597_v29 = vadd.f32 %v596_v57, %v498_v54  ;;  %v598_v60 = vpop.f32.mrb[7].mxu1  ;;  %v720_v57 = vpop.permute.xlu0 %719 }
 0x384   :  { %v627_v61 = vadd.f32 %v626_v47, %v1446_v56  ;;  %v642_v34 = vmul.f32 %v1446_v56, %v1446_v56  ;;  %v599_v38 = vadd.f32 %v598_v60, %v498_v54 }
 0x385   :  { %v646_v50 = vadd.f32 %v645_v51, %v641_v59  ;;  %v1454_v63 = vmax.f32 %v597_v29, 0.0 }
 0x386   :  { %v655_v53 = vadd.f32 %v654_v55, %v642_v34  ;;  %v1456_v0 = vmax.f32 %v599_v38, 0.0 }
 0x387   :  { %v619_v1 = vadd.f32 %v618_v58, %v1454_v63  ;;  %v643_v2 = vmul.f32 %v1454_v63, %v1454_v63 }
 0x388   :  { %v628_v3 = vadd.f32 %v627_v61, %v1456_v0  ;;  %v644_v4 = vmul.f32 %v1456_v0, %v1456_v0 }
 0x389   :  { %v620_v5 = vrot.slane %v619_v1, 4  ;;  %v647_v6 = vadd.f32 %v646_v50, %v643_v2 }
 0x38a   :  { %v629_v7 = vrot.slane %v628_v3, 4  ;;  %v656_v8 = vadd.f32 %v655_v53, %v644_v4 }
 0x38b   :  { %v621_v9 = vadd.f32 %v620_v5, %v619_v1  ;;  %v648_v10 = vrot.slane %v647_v6, 4 }
 0x38c   :  { %v630_v11 = vadd.f32 %v629_v7, %v628_v3  ;;  %v657_v12 = vrot.slane %v656_v8, 4 }
 0x38d   :  { %v622_v13 = vrot.slane %v621_v9, 2  ;;  %v649_v14 = vadd.f32 %v648_v10, %v647_v6 }
 0x38e   :  { %v631_v15 = vrot.slane %v630_v11, 2  ;;  %v658_v16 = vadd.f32 %v657_v12, %v656_v8 }
 0x38f   :  { %v623_v18 = vadd.f32 %v622_v13, %v621_v9  ;;  %v650_v33 = vrot.slane %v649_v14, 2 }
 0x390   :  { %v632_v19 = vadd.f32 %v631_v15, %v630_v11  ;;  %v659_v20 = vrot.slane %v658_v16, 2 }
 0x391   :  { %v624_v22 = vrot.slane %v623_v18, 1  ;;  %v651_v23 = vadd.f32 %v650_v33, %v649_v14 }
 0x392   :  { %v633_v24 = vrot.slane %v632_v19, 1  ;;  %v660_v25 = vadd.f32 %v659_v20, %v658_v16 }
 0x393   :  { %v625_v28 = vadd.f32 %v624_v22, %v623_v18  ;;  %v652_v30 = vrot.slane %v651_v23, 1 }
 0x394   :  { %v634_v17 = vadd.f32 %v633_v24, %v632_v19  ;;  %v661_v37 = vrot.slane %v660_v25, 1 }
 0x395   :  { %v635_v40 = vmul.f32 0.03125, %v625_v28  ;;  %v653_v41 = vadd.f32 %v652_v30, %v651_v23 }
 0x396   :  { %v636_v42 = vmul.f32 0.03125, %v634_v17  ;;  %v662_v43 = vadd.f32 %v661_v37, %v660_v25 }
 0x397   :  { %v663_v45 = vmul.f32 0.03125, %v653_v41  ;;  %v665_v46 = vmul.f32 %v635_v40, %v635_v40  ;;  %v669_v47 = vsub.f32 %v1424_v27, %v635_v40  ;;  %v671_v48 = vsub.f32 %v1428_v35, %v635_v40  ;;  %v725_v35 = vpop.permute.xlu1 %724 }
 0x398   :  { %v673_v49 = vsub.f32 %v1444_v52, %v635_v40  ;;  %v675_v51 = vsub.f32 %v1454_v63, %v635_v40  ;;  %v664_v54 = vmul.f32 0.03125, %v662_v43  ;;  %v666_v55 = vmul.f32 %v636_v42, %v636_v42  ;;  %v707_v52 = vpop.permute.xlu0 %706 }
 0x399   :  { %v667_v58 = vsub.f32 %v663_v45, %v665_v46  ;;  %v670_v59 = vsub.f32 %v1426_v32, %v636_v42  ;;  %v672_v29 = vsub.f32 %v1430_v39, %v636_v42  ;;  %v674_v60 = vsub.f32 %v1446_v56, %v636_v42 }
 0x39a   :  { %v668_v61 = vsub.f32 %v664_v54, %v666_v55  ;;  %v676_v34 = vsub.f32 %v1456_v0, %v636_v42 }
 0x39b   :  { %v677_v27 = vadd.f32 1e-05, %v667_v58  ;;  %v730_v50 = vpop.permute.xlu1 %729 }
 0x39c   :  { %v678_v38 = vadd.f32 1e-05, %v668_v61  ;;  %v752_v63 = vpop.permute.xlu0 %751 }
 0x39d   :  { %1013 = vrsqrt.f32 %v677_v27 }
 0x39e   :  { %1015 = vrsqrt.f32 %v678_v38 }
 0x39f   :  { %v757_v39 = vpop.permute.xlu1 %756 }
 0x3a0   :  { %v735_v11 = vpop.permute.xlu0 %734 }
 0x3a3   :  { %v762_v28 = vpop.permute.xlu1 %761 }
 0x3a4   :  { %v767_v42 = vpop.permute.xlu0 %766 }
 0x3a7   :  { %v1014_v53 = vpop.eup %1013  ;;  %v799_v61 = vpop.permute.xlu1 %798 }
 0x3a8   :  { %v1016_v1 = vpop.eup %1015  ;;  %v681_v2 = vmul.f32 %v1014_v53, %v669_v47  ;;  %v683_v3 = vmul.f32 %v1014_v53, %v671_v48  ;;  %v685_v32 = vmul.f32 %v1014_v53, %v673_v49  ;;  %v687_v4 = vmul.f32 %v1014_v53, %v675_v51 }
 0x3a9   :  { %v682_v5 = vmul.f32 %v1016_v1, %v670_v59  ;;  %v684_v56 = vmul.f32 %v1016_v1, %v672_v29  ;;  %v686_v6 = vmul.f32 %v1016_v1, %v674_v60  ;;  %v688_v7 = vmul.f32 %v1016_v1, %v676_v34 }
 0x3aa   :  { %v709_v0 = vmul.f32 %v692_v21, %v681_v2  ;;  %v711_v8 = vmul.f32 %v697_v26, %v683_v3  ;;  %v713_v9 = vmul.f32 %v702_v44, %v685_v32  ;;  %v715_v10 = vmul.f32 %v707_v52, %v687_v4 }
 0x3ab   :  { %v710_v12 = vmul.f32 %v692_v21, %v682_v5  ;;  %v712_v13 = vmul.f32 %v697_v26, %v684_v56  ;;  %v714_v14 = vmul.f32 %v702_v44, %v686_v6  ;;  %v716_v15 = vmul.f32 %v707_v52, %v688_v7 }
 0x3ac   :  { %v737_v16 = vadd.f32 %v720_v57, %v709_v0  ;;  %v739_v18 = vadd.f32 %v725_v35, %v711_v8  ;;  %v741_v33 = vadd.f32 %v730_v50, %v713_v9  ;;  %v743_v23 = vadd.f32 %v735_v11, %v715_v10 }
 0x3ad   :  { %v738_v19 = vadd.f32 %v720_v57, %v710_v12  ;;  %v740_v20 = vadd.f32 %v725_v35, %v712_v13  ;;  %v742_v22 = vadd.f32 %v730_v50, %v714_v14  ;;  %v744_v30 = vadd.f32 %v735_v11, %v716_v15 }
 0x3ae   :  { %v769_v24 = vmul.f32 %v752_v63, %v737_v16  ;;  %v771_v25 = vmul.f32 %v757_v39, %v739_v18  ;;  %v773_v40 = vmul.f32 %v762_v28, %v741_v33  ;;  %v775_v43 = vmul.f32 %v767_v42, %v743_v23 }
 0x3af   :  { %v770_v17 = vmul.f32 %v752_v63, %v738_v19  ;;  %v772_v37 = vmul.f32 %v757_v39, %v740_v20  ;;  %v774_v21 = vmul.f32 %v762_v28, %v742_v22  ;;  %v776_v45 = vmul.f32 %v767_v42, %v744_v30 }
 0x3b0   :  { %v777_v41 = vadd.f32 %v771_v25, %v769_v24  ;;  %v1046_v59 = vmov 1966171168   ;;  %v804_v52 = vrot.slane %v799_v61, %v383_v62 }
 0x3b1   :  { %v786_v26 = vadd.f32 %v772_v37, %v770_v17  ;;  %v811_v29 = vunpack.c.l.s4 %v1046_v59 }
 0x3b2   :  { %v778_v44 = vadd.f32 %v777_v41, %v773_v40 }
 0x3b3   :  { %v787_v46 = vadd.f32 %v786_v26, %v774_v21  ;;  %v812_v35 = vunpack.c.0.s8 %v811_v29 }
 0x3b4   :  { %v779_v47 = vadd.f32 %v778_v44, %v775_v43 }
 0x3b5   :  { %v788_v48 = vadd.f32 %v787_v46, %v776_v45  ;;  %v815_v2 = vsub.s32 %v812_v35, %v1291_v36 }
 0x3b6   :  { %v780_v49 = vrot.slane %v779_v47, 4 }
 0x3b7   :  { %v789_v51 = vrot.slane %v788_v48, 4 }
 0x3b8   :  { %v781_v54 = vadd.f32 %v780_v49, %v779_v47 }
 0x3b9   :  { %v790_v55 = vadd.f32 %v789_v51, %v788_v48 }
 0x3ba   :  { %v782_v57 = vrot.slane %v781_v54, 2 }
 0x3bb   :  { %v791_v58 = vrot.slane %v790_v55, 2 }
 0x3bc   :  { %v783_v60 = vadd.f32 %v782_v57, %v781_v54 }
 0x3bd   :  { %v792_v34 = vadd.f32 %v791_v58, %v790_v55 }
 0x3be   :  { %v784_v27 = vrot.slane %v783_v60, 1 }
 0x3bf   :  { %v793_v38 = vrot.slane %v792_v34, 1 }
 0x3c0   :  { %v785_v50 = vadd.f32 %v784_v27, %v783_v60 }
 0x3c1   :  { %v794_v63 = vadd.f32 %v793_v38, %v792_v34 }
 0x3c2   :  { %v805_v53 = vadd.f32 %v804_v52, %v785_v50 }
 0x3c3   :  { %v806_v1 = vadd.f32 %v804_v52, %v794_v63 }
 0x3c5   :  { %v809_v3 = vcombine.low %v805_v53, %v806_v1 }
 0x3c7   :  { %v816_v32 = vrot.slane %v809_v3, %v815_v2 }
 0x3c9   :  { %v823_v4 = vrot.slane %v816_v32, %v815_v2 }
 0x3cb   :  { %829 = vst.msk [vmem:[#allocation3] sm:$0x3] %vm827_vm4, %v823_v4 }
 0x3cc   :  { %1028 = shalt.err (!%p1025_p4)
}
 0x3cd   :  { %s1029_s5 = scalar_lea.hbm %s1500_s12, 32 }
 0x3ce   :  { %p1030_p5 = scmp.ne.s32.totalorder %s1500_s12, %s1029_s5  ;;  %p1033_p6 = scmp.lt.u32.totalorder %s1029_s5, %s1500_s12 }
 0x3d0   :  { %p1035_p7 = pnand %p1033_p6, %p1030_p5 }
 0x3d2   :  { %1038 = shalt.err (!%p1035_p7)
}
 0x3d3   :  { %839 = dma.vmem_to_hbm [thread:$0]  %s837_s23, 32, %s1500_s12, [#allocation4]  }
 0x3d4   :  { %1039 = dma.done.wait [#allocation4], 32  }
 0x3d5   :  { %1040 = vsyncadd [#allocation4], 4294967264 }
 0x3d6   :  { %843 = vsyncpa [#allocation4], 1 }

</bundles_post_ra>
